<compile_context>
chip_gen: v5e
topology: v5e:2x2
jax: 0.10.0
libtpu: 0.0.40
codegen_flags: <defaults>
</compile_context>

<pallas_src>
import jax
import jax.numpy as jnp
from jax.experimental import pallas as pl
from jax.experimental.pallas import tpu as pltpu


def _ltboost_kernel(w_ref, x_ref, b_ref, o_ref):
    # w_ref: (P, S) folded weight; x_ref: (S, nt); b_ref: (P, 1); o_ref: (P, nt)
    x = x_ref[...].astype(w_ref.dtype)            # in-vreg cast (no extra HBM pass)
    acc = jnp.dot(w_ref[...], x, preferred_element_type=jnp.float32)
    o_ref[...] = (acc + b_ref[...]).astype(o_ref.dtype)


def _round_up(n, m):
    return ((n + m - 1) // m) * m


def _lane_tile(total, preferred):
    """Largest multiple of 128 that divides `total` (itself a multiple of 128)
    and is <= max(preferred, 128)."""
    t = min(_round_up(max(preferred, 128), 128), total)
    t = (t // 128) * 128
    while t > 128:
        if total % t == 0:
            return t
        t -= 128
    return 128


def _vmem_limit(block_bytes):
    # Double-buffered blocks + headroom; clamp so it also fits v7x (64 MiB VMEM).
    need = 2 * block_bytes + (4 << 20)
    return int(min(max(need, 24 << 20), 40 << 20))


def _fold_weight(weight, compute_dtype):
    """Fold the seq_last normalize/denormalize into the last weight column (f32)."""
    w = weight.astype(jnp.float32)
    corr = 1.0 - jnp.sum(w, axis=1)
    w = w.at[:, -1].add(corr)
    return w.astype(compute_dtype)


def _forward_channels_last(x, w_folded, bias2, ct_pref):
    """C is a multiple of 128: transpose-free path, grid over (B, C-tiles)."""
    B, S, C = x.shape
    P = w_folded.shape[0]
    ct = _lane_tile(C, ct_pref)
    grid = (B, C // ct)

    x_isz = jnp.dtype(x.dtype).itemsize
    w_isz = jnp.dtype(w_folded.dtype).itemsize
    block_bytes = P * S * w_isz + S * ct * x_isz + P * ct * 4 + P * 4
    cost = pl.CostEstimate(
        flops=2 * P * S * B * C,
        transcendentals=0,
        bytes_accessed=B * S * C * x_isz + P * S * w_isz + B * P * C * x_isz + P * 4)

    return pl.pallas_call(
        _ltboost_kernel,
        out_shape=jax.ShapeDtypeStruct((B, P, C), x.dtype),
        grid_spec=pltpu.PrefetchScalarGridSpec(
            num_scalar_prefetch=0,
            grid=grid,
            in_specs=[
                pl.BlockSpec((P, S), lambda b, j: (0, 0)),                     # weight
                pl.BlockSpec((pl.Squeezed(), S, ct), lambda b, j: (b, 0, j)),  # x
                pl.BlockSpec((P, 1), lambda b, j: (0, 0)),                     # bias
            ],
            out_specs=pl.BlockSpec((pl.Squeezed(), P, ct), lambda b, j: (b, 0, j)),
        ),
        compiler_params=pltpu.CompilerParams(
            dimension_semantics=("parallel", "parallel"),
            vmem_limit_bytes=_vmem_limit(block_bytes)),
        cost_estimate=cost,
    )(w_folded, x, bias2)


def _forward_fused(x, w_folded, bias2, nt_pref):
    """Small / irregular C: fuse batch*channels onto the lane axis, pad to 128."""
    B, S, C = x.shape
    P = w_folded.shape[0]
    N = B * C
    cdt = jnp.dtype(w_folded.dtype)

    # Lane-dense slab (S, B*C), zero-padded so every tile is 128-aligned
    # (unmasked stores, bounded VMEM on any channel count).
    x2 = jnp.transpose(x, (1, 0, 2)).reshape(S, N).astype(cdt)
    N_pad = _round_up(max(N, 128), 128)
    if N_pad != N:
        x2 = jnp.pad(x2, ((0, 0), (0, N_pad - N)))

    nt = _lane_tile(N_pad, nt_pref)
    grid = (N_pad // nt,)

    isz = cdt.itemsize
    block_bytes = P * S * isz + S * nt * isz + P * nt * 4 + P * 4
    cost = pl.CostEstimate(
        flops=2 * P * S * N_pad,
        transcendentals=0,
        bytes_accessed=S * N_pad * isz + P * S * isz + P * N_pad * 4 + P * 4)

    out2 = pl.pallas_call(
        _ltboost_kernel,
        out_shape=jax.ShapeDtypeStruct((P, N_pad), x.dtype),
        grid_spec=pltpu.PrefetchScalarGridSpec(
            num_scalar_prefetch=0,
            grid=grid,
            in_specs=[
                pl.BlockSpec((P, S), lambda j: (0, 0)),    # folded weight (resident)
                pl.BlockSpec((S, nt), lambda j: (0, j)),   # x slab (streamed once)
                pl.BlockSpec((P, 1), lambda j: (0, 0)),    # bias
            ],
            out_specs=pl.BlockSpec((P, nt), lambda j: (0, j)),
        ),
        compiler_params=pltpu.CompilerParams(
            dimension_semantics=("parallel",),
            vmem_limit_bytes=_vmem_limit(block_bytes)),
        cost_estimate=cost,
    )(w_folded, x2, bias2)

    out2 = out2[:, :N]                               # drop lane padding
    return jnp.transpose(out2.reshape(P, B, C), (1, 0, 2))


def ltboost_forward(x, weight, bias, *, compute_dtype=None, n_tile=None):
    """NLinear forward: x (B,S,C), weight (P,S), bias (P,) -> (B,P,C)."""
    B, S, C = x.shape
    P = weight.shape[0]
    cdt = jnp.dtype(compute_dtype) if compute_dtype is not None else jnp.dtype(x.dtype)
    if n_tile is None:
        n_tile = 2048 if cdt.itemsize < 4 else 1024

    w_folded = _fold_weight(weight, cdt)             # (P, S), fold done in f32
    bias2 = bias.astype(jnp.float32).reshape(P, 1)   # (P, 1), f32

    if C >= 128 and C % 128 == 0:
        return _forward_channels_last(x, w_folded, bias2, n_tile)
    return _forward_fused(x, w_folded, bias2, n_tile)


if __name__ == "__main__":
    key = jax.random.PRNGKey(0)

    def reference(x, weight, bias):
        # Original NLinear formulation from the PyTorch module.
        seq_last = x[:, -1:, :]
        xn = x - seq_last
        return jnp.einsum("bsc,ps->bpc", xn, weight) + bias[None, :, None] + seq_last

    # Small config: batch=2, seq_len=8, pred_len=16, channels=4
    B, S, P, C = 2, 8, 16, 4
    kx, kw, kb, kx2 = jax.random.split(key, 4)

    x = jax.random.normal(kx, (B, S, C), dtype=jnp.float32)
    # Module init is (1/seq_len)*ones; perturb slightly (like a trained weight)
    # so the folded de-normalization correction is actually exercised.
    weight = (jnp.full((P, S), 1.0 / S, dtype=jnp.float32)
              + 0.05 * jax.random.normal(kw, (P, S), dtype=jnp.float32))
    bias = 0.01 * jax.random.normal(kb, (P,), dtype=jnp.float32)

    ref = reference(x, weight, bias)

    # f32, small-C fused path: tight check.
    out_f32 = jax.block_until_ready(ltboost_forward(x, weight, bias))
    assert out_f32.shape == (B, P, C)
    assert jnp.allclose(out_f32, ref, atol=1e-5, rtol=1e-5)

    # bf16 compute path (halves GEMM input bytes): loose check.
    out_bf16 = jax.block_until_ready(
        ltboost_forward(x, weight, bias, compute_dtype=jnp.bfloat16))
    assert out_bf16.shape == (B, P, C)
    assert jnp.allclose(out_bf16, ref, atol=5e-2, rtol=5e-2)

    # Large-C transpose-free path (C multiple of 128): tight check.
    C2 = 128
    x_big = jax.random.normal(kx2, (B, S, C2), dtype=jnp.float32)
    ref_big = reference(x_big, weight, bias)
    out_big = jax.block_until_ready(ltboost_forward(x_big, weight, bias))
    assert out_big.shape == (B, P, C2)
    assert jnp.allclose(out_big, ref_big, atol=1e-5, rtol=1e-5)

    print("KERNEL_OK")
</pallas_src>

<mosaic_0001>
module attributes {stable_mosaic.version = 11 : i64} {
  func.func @_ltboost_kernel(%arg0: i32, %arg1: memref<16x8xf32, #tpu.memory_space<vmem>>, %arg2: memref<8x128xf32, #tpu.memory_space<vmem>>, %arg3: memref<16x1xf32, #tpu.memory_space<vmem>>, %arg4: memref<16x128xf32, #tpu.memory_space<vmem>>) attributes {dimension_semantics = [#tpu.dimension_semantics<parallel>], iteration_bounds = array<i64: 1>, scalar_prefetch = 0 : i64, scratch_operands = 0 : i64, tpu.core_type = #tpu.core_type<tc>, window_params = [{pipeline_mode = #tpu.pipeline_mode<synchronous>, transform_indices = @transform_0, window_bounds = array<i64: 16, 8>}, {transform_indices = @transform_1, window_bounds = array<i64: 8, 128>}, {pipeline_mode = #tpu.pipeline_mode<synchronous>, transform_indices = @transform_2, window_bounds = array<i64: 16, 1>}, {transform_indices = @transform_3, window_bounds = array<i64: 16, 128>}]} {
    %c0 = arith.constant 0 : index
    %c0_0 = arith.constant 0 : index
    %0 = vector.load %arg2[%c0, %c0_0] : memref<8x128xf32, #tpu.memory_space<vmem>>, vector<8x128xf32>
    %c0_1 = arith.constant 0 : index
    %c0_2 = arith.constant 0 : index
    %1 = vector.load %arg1[%c0_1, %c0_2] : memref<16x8xf32, #tpu.memory_space<vmem>>, vector<16x8xf32>
    %cst = arith.constant dense<0.000000e+00> : vector<16x128xf32>
    %2 = tpu.matmul %1, %0, %cst {dimension_numbers = #tpu.dot_dimension_numbers<[1], [0], [0], [1], [0, 0, 1, 1], [], []>} : vector<16x8xf32>, vector<8x128xf32>, vector<16x128xf32> -> vector<16x128xf32>
    %c0_3 = arith.constant 0 : index
    %c0_4 = arith.constant 0 : index
    %3 = vector.load %arg3[%c0_3, %c0_4] : memref<16x1xf32, #tpu.memory_space<vmem>>, vector<16x1xf32>
    %4 = vector.broadcast %3 : vector<16x1xf32> to vector<16x128xf32>
    %5 = arith.addf %2, %4 : vector<16x128xf32>
    %c0_5 = arith.constant 0 : index
    %c0_6 = arith.constant 0 : index
    %6 = vector.load %arg4[%c0_5, %c0_6] : memref<16x128xf32, #tpu.memory_space<vmem>>, vector<16x128xf32>
    tpu.vector_store %arg4[%c0_5, %c0_6], %5 {strides = array<i32>} : memref<16x128xf32, #tpu.memory_space<vmem>>, vector<16x128xf32>,
    return
  }
  func.func @transform_0(%arg0: i32) -> (i32, i32) {
    %c0_i32 = arith.constant 0 : i32
    %c0_i32_0 = arith.constant 0 : i32
    %c0_i32_1 = arith.constant 0 : i32
    return %c0_i32, %c0_i32_0 : i32, i32
  }
  func.func @transform_1(%arg0: i32) -> (i32, i32) {
    %c0_i32 = arith.constant 0 : i32
    %c0_i32_0 = arith.constant 0 : i32
    return %c0_i32, %arg0 : i32, i32
  }
  func.func @transform_2(%arg0: i32) -> (i32, i32) {
    %c0_i32 = arith.constant 0 : i32
    %c0_i32_0 = arith.constant 0 : i32
    %c0_i32_1 = arith.constant 0 : i32
    return %c0_i32, %c0_i32_0 : i32, i32
  }
  func.func @transform_3(%arg0: i32) -> (i32, i32) {
    %c0_i32 = arith.constant 0 : i32
    %c0_i32_0 = arith.constant 0 : i32
    return %c0_i32, %arg0 : i32, i32
  }
}

</mosaic_0001>

<bundles_post_ra>
// kernel: tpu_custom_call.1
= control target key start
LH: loop header
LB: loop body
LE: loop exit
PB: predicated region body
PF: predicated region fallthrough
CT: control target
= control target key end

     0   :  { %vm30_vm0 = vcmask 64512   ;;  %v114_v3 = vmov 0   ;;  %s156_s0 = inlined_call_operand.vmem [shape: f32[16,8], index: 0, kind: input, shape index: {}]   ;;  %s157_s1 = inlined_call_operand.vmem [shape: f32[8,128], index: 1, kind: input, shape index: {}]   ;;  %s158_s2 = inlined_call_operand.vmem [shape: f32[16,1], index: 2, kind: input, shape index: {}]   ;;  %s159_s3 = inlined_call_operand.hbm [shape: f32[16,128], index: 3, kind: output, shape index: {}]  }
   0x1   :  { %v15_v0 = vld [vmem:[%s157_s1] sm:$0xff]  ;;  %87 = vset.pattern.permute.xlu0 %v114_v3  ;;  %v17_v4 = vld [vmem:[%s156_s0 + $0x8] sm:$0xff] }
   0x2   :  { %v18_v1 = vld [vmem:[%s158_s2] sm:$0xff]  ;;  %52 = vmatpush.msra.mxu0 %v15_v0 }
   0x3   :  { %v16_v2 = vld [vmem:[%s156_s0] sm:$0xff] }
   0x4   :  { %8 = vsyncpa [#allocation3], 0  ;;  %82 = vmatpush.msra.mxu1 %v15_v0  ;;  %22 = vperm.xlu0 %87, %v18_v1   ;;  %v19_v5 = vld [vmem:[%s158_s2 + $0x8] sm:$0xff]  ;;  %s115_s21 = smov [#allocation2]   ;;  %s68_s25 = sshll.u32 %s159_s3, 4  ;;  %s69_s25 = int_to_ptr.hbm [resolvable:$true] %s68_s25 }
   0x5   :  { %80 = vmatmul.msk.f32.vlgmr.msra.gmra.mxu0 %vm30_vm0, %v16_v2  ;;  %81 = vmatmul.msk.f32.vlgmr.msra.gmra.mxu1 %vm30_vm0, %v17_v4  ;;  %s66_s22 = sshll.u32 %s115_s21, 4  ;;  %s116_s0 = smov 128   ;;  %s67_s22 = int_to_ptr.vmem [resolvable:$true] %s66_s22 }
   0x6   :  { %s117_s26 = smov 8  }
   0xc   :  { %27 = vperm.xlu0 %87, %v19_v5  }
  0x76   :  { %v23_v6 = vpop.permute.xlu0 %22 }
  0x7e   :  { %v28_v7 = vpop.permute.xlu0 %27 }
  0x82   :  { %v54_v8 = vpop.f32.mrf.mxu0  ;;  %v57_v9 = vpop.f32.mrf.mxu1 }
  0x83   :  { %v55_v10 = vadd.f32 %v54_v8, %v23_v6  ;;  %v58_v11 = vadd.f32 %v57_v9, %v28_v7 }
  0x85   :  { %60 = vst [vmem:[#allocation2] sm:$0xff] %v55_v10 }
  0x86   :  { %61 = vst [vmem:[#allocation2 + $0x8] sm:$0xff] %v58_v11 }
  0x87   :  { %74 = dma.vmem_to_hbm [thread:$0]  %s67_s22, 256, %s69_s25, [#allocation3], %s116_s0, %s116_s0, %s117_s26  }
  0x88   :  { %112 = dma.done.wait [#allocation3], 256  }
  0x89   :  { %113 = vsyncadd [#allocation3], 4294967040 }
  0x8a   :  { %79 = vsyncpa [#allocation3], 1 }

</bundles_post_ra>
